<compile_context>
chip_gen: v5e
topology: v5e:2x2
jax: 0.10.0
libtpu: 0.0.40
codegen_flags: <defaults>
</compile_context>

<pallas_src>
import functools
import math

import jax
import jax.numpy as jnp
from jax.experimental import pallas as pl
from jax.experimental.pallas import tpu as pltpu

_LOG_2PI = math.log(2.0 * math.pi)
_TWO_PI = 2.0 * math.pi


def _normal_dist_kernel(u_ref, z_ref, lp_ref, *, dim: int):
    """u: (2, T, H) uniforms in [0,1). z: (T, 2H) f32. lp: (T, 1) f32."""
    u1 = u_ref[0]  # (T, H)
    u2 = u_ref[1]  # (T, H)

    # Box-Muller: r = sqrt(-2*log(1-u1)) with 1-u1 in (0, 1] (log-safe),
    # theta = 2*pi*u2.  Use BOTH branches -> two iid normals per uniform pair.
    r = jnp.sqrt(-2.0 * jnp.log(1.0 - u1))
    theta = jnp.float32(_TWO_PI) * u2
    z = jnp.concatenate([r * jnp.cos(theta), r * jnp.sin(theta)], axis=-1)
    z_ref[...] = z

    # log N(z; 0, I) = -0.5*dim*log(2*pi) - 0.5*sum(z^2, -1)
    sq = z * z
    if z.shape[-1] != dim:  # odd dim: exclude the padded last column
        col = jax.lax.broadcasted_iota(jnp.int32, z.shape, dimension=1)
        sq = jnp.where(col < dim, sq, 0.0)
    lp_ref[...] = jnp.float32(-0.5 * dim * _LOG_2PI) - 0.5 * jnp.sum(
        sq, axis=-1, keepdims=True
    )


def _round_up(x: int, m: int) -> int:
    return ((x + m - 1) // m) * m


def _pick_tile_n(num_samples: int, dim_pad: int) -> int:
    """Row tile: one full block for small N, ~512 KiB of z per block otherwise."""
    if num_samples <= 1024:
        return _round_up(max(num_samples, 8), 8)
    rows = (512 * 1024) // (4 * dim_pad)
    rows = max(128, min(4096, (rows // 128) * 128))
    return rows


def normal_dist_forward(num_samples: int, dim: int, key):
    """Pallas equivalent of NormalDist(dim).forward(num_samples)."""
    dim_half = (dim + 1) // 2      # uniform pairs per row (one pair -> two normals)
    dim_pad = 2 * dim_half         # generated columns (== dim when dim is even)

    tile_n = _pick_tile_n(num_samples, dim_pad)
    n_pad = _round_up(num_samples, tile_n)

    # Entropy from jax.random (interpret/TPU-safe); the kernel does the transform.
    # Stacked layout (2, N, H): u[0] -> radius branch, u[1] -> angle branch.
    u = jax.random.uniform(key, (2, n_pad, dim_half), dtype=jnp.float32)

    # Per-step footprint: stacked uniforms + z + lp, all f32, double-buffered.
    block_bytes = tile_n * (2 * dim_half + dim_pad + 1) * 4
    vmem_bytes = int(min(max(4 * block_bytes, 4 << 20), 32 << 20))

    grid = (n_pad // tile_n,)
    z_pad, lp_pad = pl.pallas_call(
        functools.partial(_normal_dist_kernel, dim=dim),
        grid=grid,
        in_specs=[
            pl.BlockSpec((2, tile_n, dim_half), lambda i: (0, i, 0)),
        ],
        out_specs=(
            pl.BlockSpec((tile_n, dim_pad), lambda i: (i, 0)),
            pl.BlockSpec((tile_n, 1), lambda i: (i, 0)),
        ),
        out_shape=(
            jax.ShapeDtypeStruct((n_pad, dim_pad), jnp.float32),
            jax.ShapeDtypeStruct((n_pad, 1), jnp.float32),
        ),
        compiler_params=pltpu.CompilerParams(
            dimension_semantics=("parallel",),
            vmem_limit_bytes=vmem_bytes,
        ),
    )(u)

    # Match PyTorch return shapes: z (N, D), log_prob (N,).
    return z_pad[:num_samples, :dim], lp_pad[:num_samples, 0]


if __name__ == "__main__":
    num_samples = 8
    dim = 32

    key = jax.random.PRNGKey(0)
    z, log_prob = normal_dist_forward(num_samples, dim, key)
    z = jax.block_until_ready(z)
    log_prob = jax.block_until_ready(log_prob)

    assert z.shape == (num_samples, dim) and z.dtype == jnp.float32
    assert log_prob.shape == (num_samples,) and log_prob.dtype == jnp.float32
    assert bool(jnp.all(jnp.isfinite(z)))

    # log_prob must equal the closed form evaluated on the returned z.
    ref_lp = -0.5 * dim * math.log(2.0 * math.pi) - 0.5 * jnp.sum(z * z, axis=-1)
    assert jnp.allclose(log_prob, ref_lp, rtol=1e-5, atol=1e-4), (
        "log_prob mismatch vs closed form"
    )

    # Loose distribution sanity (deterministic seed, non-flaky bounds).
    assert abs(float(jnp.mean(z))) < 0.5
    assert 0.5 < float(jnp.std(z)) < 1.5

    print("KERNEL_OK")
</pallas_src>

<mosaic_0001>
module attributes {stable_mosaic.version = 11 : i64} {
  func.func @_normal_dist_kernel(%arg0: i32, %arg1: memref<2x8x16xf32, #tpu.memory_space<vmem>>, %arg2: memref<8x32xf32, #tpu.memory_space<vmem>>, %arg3: memref<8x1xf32, #tpu.memory_space<vmem>>) attributes {dimension_semantics = [#tpu.dimension_semantics<parallel>], iteration_bounds = array<i64: 1>, scalar_prefetch = 0 : i64, scratch_operands = 0 : i64, tpu.core_type = #tpu.core_type<tc>, window_params = [{transform_indices = @transform_0, window_bounds = array<i64: 2, 8, 16>}, {transform_indices = @transform_1, window_bounds = array<i64: 8, 32>}, {transform_indices = @transform_2, window_bounds = array<i64: 8, 1>}]} {
    %c0 = arith.constant 0 : index
    %c0_0 = arith.constant 0 : index
    %c0_1 = arith.constant 0 : index
    %0 = vector.load %arg1[%c0, %c0_0, %c0_1] : memref<2x8x16xf32, #tpu.memory_space<vmem>>, vector<1x8x16xf32>
    %1 = vector.shape_cast %0 : vector<1x8x16xf32> to vector<8x16xf32>
    %c1 = arith.constant 1 : index
    %c0_2 = arith.constant 0 : index
    %c0_3 = arith.constant 0 : index
    %2 = vector.load %arg1[%c1, %c0_2, %c0_3] : memref<2x8x16xf32, #tpu.memory_space<vmem>>, vector<1x8x16xf32>
    %3 = vector.shape_cast %2 : vector<1x8x16xf32> to vector<8x16xf32>
    %cst = arith.constant 1.000000e+00 : f32
    %4 = vector.broadcast %cst : f32 to vector<8x16xf32>
    %5 = arith.subf %4, %1 : vector<8x16xf32>
    %6 = math.log %5 : vector<8x16xf32>
    %cst_4 = arith.constant -2.000000e+00 : f32
    %7 = vector.broadcast %cst_4 : f32 to vector<8x16xf32>
    %8 = arith.mulf %7, %6 : vector<8x16xf32>
    %9 = math.sqrt %8 : vector<8x16xf32>
    %cst_5 = arith.constant 6.28318548 : f32
    %10 = vector.broadcast %cst_5 : f32 to vector<8x16xf32>
    %11 = arith.mulf %10, %3 : vector<8x16xf32>
    %12 = math.cos %11 : vector<8x16xf32>
    %13 = arith.mulf %9, %12 : vector<8x16xf32>
    %14 = math.sin %11 : vector<8x16xf32>
    %15 = arith.mulf %9, %14 : vector<8x16xf32>
    %16 = tpu.concatenate %13, %15 in 1 : vector<8x16xf32>, vector<8x16xf32> -> vector<8x32xf32>
    %c0_6 = arith.constant 0 : index
    %c0_7 = arith.constant 0 : index
    %17 = vector.load %arg2[%c0_6, %c0_7] : memref<8x32xf32, #tpu.memory_space<vmem>>, vector<8x32xf32>
    tpu.vector_store %arg2[%c0_6, %c0_7], %16 {strides = array<i32>} : memref<8x32xf32, #tpu.memory_space<vmem>>, vector<8x32xf32>,
    %18 = arith.mulf %16, %16 : vector<8x32xf32>
    %cst_8 = arith.constant dense<0.000000e+00> : vector<8xf32>
    %19 = vector.multi_reduction <add>, %18, %cst_8 [1] : vector<8x32xf32> to vector<8xf32>
    %20 = vector.shape_cast %19 : vector<8xf32> to vector<8x1xf32>
    %cst_9 = arith.constant 5.000000e-01 : f32
    %21 = vector.broadcast %cst_9 : f32 to vector<8x1xf32>
    %22 = arith.mulf %21, %20 : vector<8x1xf32>
    %cst_10 = arith.constant -29.4060326 : f32
    %23 = vector.broadcast %cst_10 : f32 to vector<8x1xf32>
    %24 = arith.subf %23, %22 : vector<8x1xf32>
    %c0_11 = arith.constant 0 : index
    %c0_12 = arith.constant 0 : index
    %25 = vector.load %arg3[%c0_11, %c0_12] : memref<8x1xf32, #tpu.memory_space<vmem>>, vector<8x1xf32>
    tpu.vector_store %arg3[%c0_11, %c0_12], %24 {strides = array<i32>} : memref<8x1xf32, #tpu.memory_space<vmem>>, vector<8x1xf32>,
    return
  }
  func.func @transform_0(%arg0: i32) -> (i32, i32, i32) {
    %c0_i32 = arith.constant 0 : i32
    %c0_i32_0 = arith.constant 0 : i32
    %c0_i32_1 = arith.constant 0 : i32
    return %c0_i32, %arg0, %c0_i32_0 : i32, i32, i32
  }
  func.func @transform_1(%arg0: i32) -> (i32, i32) {
    %c0_i32 = arith.constant 0 : i32
    %c0_i32_0 = arith.constant 0 : i32
    return %arg0, %c0_i32 : i32, i32
  }
  func.func @transform_2(%arg0: i32) -> (i32, i32) {
    %c0_i32 = arith.constant 0 : i32
    %c0_i32_0 = arith.constant 0 : i32
    return %arg0, %c0_i32 : i32, i32
  }
}

</mosaic_0001>

<bundles_post_ra>
// kernel: tpu_custom_call.1
= control target key start
LH: loop header
LB: loop body
LE: loop exit
PB: predicated region body
PF: predicated region fallthrough
CT: control target
= control target key end

     0   :  { %8 = vsyncpa [#allocation3], 0  ;;  %s560_s0 = inlined_call_operand.hbm [shape: f32[2,8,16], index: 0, kind: input, shape index: {}]   ;;  %s561_s1 = inlined_call_operand.hbm [shape: f32[8,32], index: 1, kind: output, shape index: {0}]   ;;  %s562_s2 = inlined_call_operand.vmem [shape: f32[8,1], index: 2, kind: output, shape index: {1}]  }
   0x1   :  { %9 = vsyncpa [#allocation4], 0  ;;  %s14_s11 = sshll.u32 %s560_s0, 4  ;;  %s469_s12 = smov [#allocation2]   ;;  %s15_s11 = int_to_ptr.hbm [resolvable:$true] %s14_s11 }
   0x2   :  { %s16_s13 = sshll.u32 %s469_s12, 4  ;;  %s470_s14 = smov 128   ;;  %s17_s13 = int_to_ptr.vmem [resolvable:$true] %s16_s13 }
   0x3   :  { %s471_s15 = smov 8  }
   0x4   :  { %22 = dma.hbm_to_vmem [thread:$0]  %s15_s11, 256, %s17_s13, [#allocation3], %s470_s14, %s470_s14, %s471_s15  }
   0x5   :  { %465 = dma.done.wait [#allocation3], 256  }
   0x6   :  { %466 = vsyncadd [#allocation3], 4294967040  ;;  %v29_v0 = vld [vmem:[#allocation2 + $0x8] sm:$0xff]  ;;  %v472_v13 = vmov 683565275   ;;  %s479_s0 = smov 16  }
   0x7   :  { %v499_v1 = vmul.f32 6.2831855, %v29_v0  ;;  %v473_v15 = vmov 2475754826   ;;  %v474_v17 = vmov 2131351028  }
   0x8   :  { %v475_v19 = vmov 2102212464   ;;  %v476_v21 = vmov 920167782   ;;  %v477_v27 = vmov 1326507024  }
   0x9   :  { %v50_v2 = vand.u32 2139095040, %v499_v1  ;;  %v47_v4 = vand.u32 2147483647, %v499_v1  ;;  %vm49_vm12 = vcmp.lt.s32.totalorder %v499_v1, 0  ;;  %s480_s16 = smov [#allocation5]   ;;  %s381_s20 = sshll.u32 %s561_s1, 4  ;;  %s382_s20 = int_to_ptr.hbm [resolvable:$true] %s381_s20 }
   0xa   :  { %s379_s17 = sshll.u32 %s480_s16, 4  ;;  %s380_s17 = int_to_ptr.vmem [resolvable:$true] %s379_s17 }
   0xb   :  { %v51_v3 = vshrl.u32 %v50_v2, 23  ;;  %v54_v7 = vand.u32 8388607, %v47_v4  ;;  %v478_v2 = vmov 0   ;;  %vm48_vm13 = vcmp.le.f32.partialorder %v47_v4, 0.7853982 }
   0xd   :  { %v395_v5 = vadd.s32 4294967169, %v51_v3  ;;  %v55_v10 = vor.u32 8388608, %v54_v7 }
   0xf   :  { %v57_v6 = vadd.s32 1, %v395_v5  ;;  %v508_v29 = vshll.u32 %v55_v10, 8 }
  0x11   :  { %vm58_vm0 = vcmp.gt.s32.totalorder %v57_v6, 0  ;;  %v96_v41 = vand.u32 65535, %v508_v29  ;;  %v97_v42 = vshrl.u32 %v508_v29, 16 }
  0x12   :  { %v59_v8 = vsel %vm58_vm0, %v57_v6, 0 }
  0x13   :  { %v61_v9 = vand.u32 31, %v59_v8  ;;  %v505_v11 = vshrl.u32 %v59_v8, 5 }
  0x15   :  { %v62_v12 = vsub.s32 32, %v61_v9  ;;  %v64_v14 = vshll.u32 %v472_v13, %v61_v9  ;;  %v67_v16 = vshll.u32 %v473_v15, %v61_v9  ;;  %v70_v18 = vshll.u32 %v474_v17, %v61_v9 }
  0x16   :  { %v73_v20 = vshll.u32 %v475_v19, %v61_v9  ;;  %v76_v22 = vshll.u32 %v476_v21, %v61_v9  ;;  %vm79_vm1 = vcmp.lt.s32.totalorder %v505_v11, 1  ;;  %vm82_vm2 = vcmp.lt.s32.totalorder %v505_v11, 4 }
  0x17   :  { %v65_v23 = vshrl.u32 %v473_v15, %v62_v12  ;;  %v68_v24 = vshrl.u32 %v474_v17, %v62_v12  ;;  %v71_v25 = vshrl.u32 %v475_v19, %v62_v12  ;;  %v74_v26 = vshrl.u32 %v476_v21, %v62_v12  ;;  %v27_v21 = vld [vmem:[#allocation2] sm:$0xff] }
  0x18   :  { %v77_v28 = vshrl.u32 %v477_v27, %v62_v12  ;;  %vm81_vm3 = vcmp.lt.s32.totalorder %v505_v11, 3  ;;  %vm80_vm4 = vcmp.lt.s32.totalorder %v505_v11, 2  ;;  %v63_v49 = vshrl.u32 %v472_v13, %v62_v12 }
  0x19   :  { %v66_v30 = vor.u32 %v65_v23, %v64_v14  ;;  %v69_v31 = vor.u32 %v68_v24, %v67_v16  ;;  %v72_v32 = vor.u32 %v71_v25, %v70_v18  ;;  %v75_v33 = vor.u32 %v74_v26, %v73_v20 }
  0x1a   :  { %v78_v34 = vor.u32 %v77_v28, %v76_v22  ;;  %v30_v26 = vsub.f32 1.0, %v27_v21 }
  0x1b   :  { %v87_v35 = vsel %vm79_vm1, %v66_v30, %v69_v31  ;;  %v88_v36 = vsel %vm82_vm2, %v75_v33, 920167782  ;;  %v91_v37 = vsel %vm79_vm1, %v69_v31, %v72_v32  ;;  %v83_v61 = vsel %vm79_vm1, %v63_v49, %v66_v30 }
  0x1c   :  { %v92_v38 = vsel %vm82_vm2, %v78_v34, 1326507024  ;;  %v89_v39 = vsel %vm81_vm3, %v72_v32, %v88_v36  ;;  %v84_v0 = vsel %vm82_vm2, %v72_v32, 2102212464  ;;  %413 = vlog2.f32 %v30_v26 }
  0x1d   :  { %v93_v40 = vsel %vm81_vm3, %v75_v33, %v92_v38  ;;  %v90_v43 = vsel %vm80_vm4, %v87_v35, %v89_v39  ;;  %v85_v13 = vsel %vm81_vm3, %v69_v31, %v84_v0 }
  0x1e   :  { %v94_v44 = vsel %vm80_vm4, %v91_v37, %v93_v40  ;;  %v120_v47 = vand.u32 65535, %v90_v43  ;;  %v121_v48 = vshrl.u32 %v90_v43, 16  ;;  %v86_v22 = vsel %vm80_vm4, %v83_v61, %v85_v13 }
  0x1f   :  { %v98_v45 = vand.u32 65535, %v94_v44  ;;  %v99_v46 = vshrl.u32 %v94_v44, 16  ;;  %v140_v27 = vmul.u32 %v508_v29, %v86_v22 }
  0x20   :  { %v122_v53 = vmul.u32 %v120_v47, %v96_v41  ;;  %v123_v54 = vmul.u32 %v121_v48, %v96_v41  ;;  %v124_v55 = vmul.u32 %v120_v47, %v97_v42  ;;  %v125_v59 = vmul.u32 %v121_v48, %v97_v42 }
  0x21   :  { %v100_v50 = vmul.u32 %v98_v45, %v96_v41  ;;  %v101_v51 = vmul.u32 %v99_v46, %v96_v41  ;;  %v102_v52 = vmul.u32 %v98_v45, %v97_v42  ;;  %v103_v56 = vmul.u32 %v99_v46, %v97_v42 }
  0x22   :  { %v126_v60 = vshll.u32 %v123_v54, 16  ;;  %v128_v63 = vshll.u32 %v124_v55, 16  ;;  %v127_v10 = vshrl.u32 %v123_v54, 16  ;;  %v129_v17 = vshrl.u32 %v124_v55, 16  ;;  %v414_v34 = vpop.eup %413 }
  0x23   :  { %v104_v57 = vshll.u32 %v101_v51, 16  ;;  %v106_v58 = vshll.u32 %v102_v52, 16  ;;  %v105_v6 = vshrl.u32 %v101_v51, 16  ;;  %v107_v14 = vshrl.u32 %v102_v52, 16 }
  0x24   :  { %vm130_vm6 = vc.u32 %v122_v53, %v126_v60  ;;  %v132_v5 = vadd.s32 %v126_v60, %v122_v53  ;;  %v32_v37 = vmul.f32 0.6931472, %v414_v34 }
  0x25   :  { %vm108_vm5 = vc.u32 %v100_v50, %v104_v57  ;;  %v110_v62 = vadd.s32 %v104_v57, %v100_v50  ;;  %v131_v8 = vsel %vm130_vm6, 1, %v478_v2  ;;  %vm190_vm6 = vweird.f32 %v499_v1 }
  0x26   :  { %v109_v3 = vsel %vm108_vm5, 1, %v478_v2  ;;  %v133_v12 = vadd.s32 %v131_v8, %v125_v59  ;;  %vm134_vm8 = vc.u32 %v132_v5, %v128_v63  ;;  %v136_v20 = vadd.s32 %v132_v5, %v128_v63 }
  0x27   :  { %v111_v7 = vadd.s32 %v109_v3, %v103_v56  ;;  %vm112_vm7 = vc.u32 %v110_v62, %v106_v58  ;;  %v135_v16 = vsel %vm134_vm8, 1, %v478_v2  ;;  %v540_v39 = vmul.f32 -2.0, %v32_v37 }
  0x28   :  { %v113_v9 = vsel %vm112_vm7, 1, %v478_v2  ;;  %v137_v18 = vadd.s32 %v135_v16, %v133_v12  ;;  %vm362_vm7 = vcmask 130048   ;;  %vm364_vm8 = vcmask 261120  }
  0x29   :  { %v115_v15 = vadd.s32 %v113_v9, %v111_v7  ;;  %415 = vrsqrt.f32 %v540_v39  ;;  %vm41_vm14 = vcmp.eq.f32.partialorder %v540_v39, inf  ;;  %vm43_vm1 = vcmp.eq.f32.partialorder %v540_v39, 0.0 }
  0x2a   :  { %v138_v23 = vadd.s32 %v137_v18, %v127_v10  ;;  %v44_v21 = vand.u32 2147483648, %v540_v39 }
  0x2b   :  { %v116_v19 = vadd.s32 %v115_v15, %v105_v6 }
  0x2c   :  { %v139_v25 = vadd.s32 %v138_v23, %v129_v17 }
  0x2d   :  { %v117_v24 = vadd.s32 %v116_v19, %v107_v14 }
  0x2e   :  { %v143_v28 = vadd.s32 1, %v139_v25 }
  0x2f   :  { %vm142_vm9 = vc.u32 %v117_v24, %v136_v20  ;;  %v141_v29 = vadd.s32 %v136_v20, %v117_v24  ;;  %v416_v48 = vpop.eup %415 }
  0x30   :  { %v144_v30 = vsel %vm142_vm9, %v143_v28, %v139_v25  ;;  %v35_v53 = vmul.f32 %v416_v48, %v540_v39  ;;  %vm372_vm9 = vcmask 7168  }
  0x31   :  { %v145_v31 = vadd.s32 %v144_v30, %v140_v27 }
  0x32   :  { %v36_v56 = vmul.f32 %v416_v48, %v35_v53 }
  0x33   :  { %v146_v32 = vadd.s32 536870912, %v145_v31 }
  0x34   :  { %v37_v60 = vmul.f32 0.5, %v36_v56 }
  0x35   :  { %v147_v33 = vshrl.u32 %v146_v32, 30 }
  0x36   :  { %v38_v5 = vsub.f32 1.5, %v37_v60 }
  0x37   :  { %v148_v35 = vshll.u32 %v147_v33, 30  ;;  %v171_v57 = vsub.s32 4, %v147_v33 }
  0x38   :  { %v39_v12 = vmul.f32 %v416_v48, %v38_v5 }
  0x39   :  { %v149_v36 = vsub.s32 %v145_v31, %v148_v35  ;;  %v172_v61 = vsel %vm49_vm12, %v171_v57, %v147_v33 }
  0x3a   :  { %v174_v0 = vsel %vm48_vm13, 0, %v172_v61  ;;  %v40_v18 = vmul.f32 %v39_v12, %v540_v39 }
  0x3b   :  { %vm150_vm10 = vcmp.lt.s32.totalorder %v149_v36, 0  ;;  %v151_v11 = vsub.s32 0, %v149_v36  ;;  %v346_v8 = vadd.s32 3, %v174_v0  ;;  %v191_v4 = vand.u32 3, %v174_v0 }
  0x3c   :  { %v42_v24 = vsel %vm41_vm14, %v540_v39, %v40_v18 }
  0x3d   :  { %v152_v38 = vsel %vm150_vm10, %v151_v11, %v149_v36  ;;  %v347_v15 = vand.u32 3, %v346_v8  ;;  %vm196_vm15 = vcmp.eq.s32.totalorder %v191_v4, 2  ;;  %vm192_vm2 = vcmp.lt.s32.totalorder %v191_v4, 2 }
  0x3e   :  { %v153_v40 = vclz %v152_v38  ;;  %vm193_vm3 = vcmp.eq.s32.totalorder %v191_v4, 0  ;;  %v45_v28 = vsel %vm43_vm1, %v44_v21, %v42_v24 }
  0x3f   :  { %vm352_vm0 = vcmp.eq.s32.totalorder %v347_v15, 2  ;;  %vm349_vm4 = vcmp.eq.s32.totalorder %v347_v15, 0  ;;  %vm348_vm5 = vcmp.lt.s32.totalorder %v347_v15, 2 }
  0x40   :  { %v396_v41 = vadd.s32 4294967294, %v153_v40 }
  0x42   :  { %vm397_vm11 = vcmp.lt.s32.totalorder %v396_v41, 0 }
  0x43   :  { %v156_v42 = vsel %vm397_vm11, 0, %v396_v41 }
  0x44   :  { %v157_v43 = vsub.s32 32, %v156_v42  ;;  %v158_v44 = vshll.u32 %v149_v36, %v156_v42  ;;  %v161_v45 = vsub.s32 4294967266, %v156_v42 }
  0x46   :  { %v159_v46 = vshrl.u32 %v141_v29, %v157_v43  ;;  %v162_v47 = vadd.s32 127, %v161_v45 }
  0x48   :  { %v160_v49 = vor.u32 %v159_v46, %v158_v44  ;;  %v163_v50 = vshll.u32 %v162_v47, 23 }
  0x4a   :  { %v164_v51 = vor.u32 4788187, %v163_v50  ;;  %v167_v52 = vcvt.s32.f32 %v160_v49 }
  0x4c   :  { %v165_v54 = vand.u32 2147483647, %v164_v51 }
  0x4e   :  { %v168_v55 = vmul.f32 %v167_v52, %v165_v54 }
  0x50   :  { %v169_v58 = vxor.u32 2147483648, %v168_v55 }
  0x52   :  { %v170_v59 = vsel %vm49_vm12, %v169_v58, %v168_v55 }
  0x53   :  { %v173_v62 = vsel %vm48_vm13, %v499_v1, %v170_v59 }
  0x54   :  { %v175_v63 = vmul.f32 %v173_v62, %v173_v62 }
  0x56   :  { %v176_v2 = vmul.f32 -0.001358992, %v175_v63  ;;  %v183_v3 = vmul.f32 -0.00019511016, %v175_v63 }
  0x58   :  { %v177_v6 = vadd.f32 0.041655596, %v176_v2  ;;  %v184_v7 = vadd.f32 0.008332121, %v183_v3 }
  0x5a   :  { %v178_v9 = vmul.f32 %v177_v6, %v175_v63  ;;  %v185_v10 = vmul.f32 %v184_v7, %v175_v63 }
  0x5c   :  { %v179_v13 = vadd.f32 -0.4999988, %v178_v9  ;;  %v186_v14 = vadd.f32 -0.16666654, %v185_v10 }
  0x5e   :  { %v180_v16 = vmul.f32 %v179_v13, %v175_v63  ;;  %v187_v17 = vmul.f32 %v186_v14, %v175_v63 }
  0x60   :  { %v181_v19 = vadd.f32 1.0, %v180_v16  ;;  %v188_v20 = vadd.f32 1.0, %v187_v17 }
  0x62   :  { %v189_v22 = vmul.f32 %v188_v20, %v173_v62  ;;  %v197_v23 = vxor.u32 2147483648, %v181_v19 }
  0x64   :  { %v194_v25 = vxor.u32 2147483648, %v189_v22  ;;  %v198_v26 = vsel %vm196_vm15, %v197_v23, %v189_v22  ;;  %v354_v27 = vsel %vm352_vm0, %v197_v23, %v189_v22 }
  0x66   :  { %v195_v30 = vsel %vm193_vm3, %v181_v19, %v194_v25  ;;  %v351_v31 = vsel %vm349_vm4, %v181_v19, %v194_v25 }
  0x67   :  { %v199_v32 = vsel %vm192_vm2, %v195_v30, %v198_v26  ;;  %v355_v33 = vsel %vm348_vm5, %v351_v31, %v354_v27 }
  0x68   :  { %v200_v34 = vsel %vm190_vm6, nan, %v199_v32  ;;  %v356_v35 = vsel %vm190_vm6, nan, %v355_v33 }
  0x69   :  { %v357_v36 = vmul.f32 %v356_v35, %v45_v28  ;;  %v201_v37 = vmul.f32 %v200_v34, %v45_v28 }
  0x6b   :  { %359 = vrot.lane.b32.xlu0 %v357_v36, %s479_s0 }
  0xdd   :  { %v360_v1 = vpop.permute.xlu0 %359 }
  0xde   :  { %v363_v11 = vsel %vm362_vm7, %v201_v37, %v360_v1 }
  0xdf   :  { %v366_v38 = vmul.f32 %v363_v11, %v363_v11  ;;  %365 = vst.msk [vmem:[#allocation5] sm:$0xff] %vm364_vm8, %v363_v11 }
  0xe0   :  { %384 = dma.vmem_to_hbm [thread:$0]  %s380_s17, 128, %s382_s20, [#allocation4]  }
  0xe1   :  { %v367_v39 = vsel %vm364_vm8, %v366_v38, 0.0 }
  0xe2   :  { %368 = vadd.xlane.f32.xlu0 %v367_v39 }
 0x155   :  { %v369_v40 = vpop.xlane.xlu0 %368 }
 0x156   :  { %v370_v41 = vmul.f32 0.5, %v369_v40 }
 0x158   :  { %v371_v29 = vsub.f32 -29.406033, %v370_v41 }
 0x15a   :  { %373 = vst.msk [vmem:[%s562_s2] sm:$0xff] %vm372_vm9, %v371_v29 }
 0x15b   :  { %467 = dma.done.wait [#allocation4], 128  }
 0x15c   :  { %468 = vsyncadd [#allocation4], 4294967168 }
 0x15d   :  { %393 = vsyncpa [#allocation3], 1 }
 0x15e   :  { %394 = vsyncpa [#allocation4], 1 }

</bundles_post_ra>
